<compile_context>
chip_gen: v7x
topology: tpu7x:2x2x1
jax: 0.10.0
libtpu: 0.0.40
codegen_flags: <defaults>
</compile_context>

<pallas_src>
import jax
import jax.numpy as jnp
from jax.experimental import pallas as pl
from jax.experimental.pallas import tpu as pltpu


def lstm_forward_kernel(seq_ref, wih_ref, whh_ref, b_ref, wlin_ref, blin_ref,
                        out_ref):
    H = whh_ref.shape[0]
    L = seq_ref.shape[0]

    # Hoist weight / bias loads off the serial path (vreg-resident).
    whh = whh_ref[...]                    # (H, 4H) f32, i/f/o columns pre-scaled x0.5
    wih = wih_ref[...]                    # (1, 4H) f32, pre-scaled
    b = b_ref[...]                        # (1, 4H) f32, pre-scaled

    # Per-lane affine recovering sigmoid from the single tanh:
    #   sigmoid(x) = 0.5 * tanh(x/2) + 0.5   (x/2 folded into packed weights).
    # Constants, hoisted before the unrolled loop.
    lane = jax.lax.broadcasted_iota(jnp.int32, (1, 4 * H), 1)
    is_g = (lane >= 2 * H) & (lane < 3 * H)
    post_scale = jnp.where(is_g, 1.0, 0.5).astype(jnp.float32)
    post_bias = jnp.where(is_g, 0.0, 0.5).astype(jnp.float32)

    h = jnp.zeros((1, H), jnp.float32)
    c = jnp.zeros((1, H), jnp.float32)

    # Fully unrolled recurrence (L static, tiny). Gate order = PyTorch (i,f,g,o).
    for t in range(L):
        # Input projection: scalar SMEM read (no sublane extraction on the
        # serial path); input_size == 1 so this is a VPU broadcast mul-add.
        gates = seq_ref[t] * wih + b                          # (1, 4H), pre-scaled
        if t > 0:  # h == 0 at t == 0: skip one MXU fill/drain on the chain.
            gates = gates + jnp.dot(h, whh,
                                    preferred_element_type=jnp.float32)
        # TODO(synk): pltpu.matmul_push_rhs/acc_lhs/pop could keep whh staged in
        # the MXU across steps; kept jnp.dot for portability across v5e/v6e/v7x.

        act = jnp.tanh(gates) * post_scale + post_bias        # one EUP push/step
        i_g = act[:, 0:H]
        f_g = act[:, H:2 * H]
        g_g = act[:, 2 * H:3 * H]
        o_g = act[:, 3 * H:4 * H]

        c = f_g * c + i_g * g_g
        h = o_g * jnp.tanh(c)

    # pred[-1] = Linear(h_L): VPU multiply + XLU lane reduce (no MXU fill/drain
    # for a 1-lane result).  h:(1,H) broadcast against wlin:(out,H).
    out_ref[...] = (jnp.sum(h * wlin_ref[...], axis=-1, keepdims=True)
                    + blin_ref[...])                          # (out, 1)


def pack_params(params):
    """One-time host-side packing: transpose, bias fuse, gate pre-scale, cast."""
    w_ih, w_hh, b_ih, b_hh, w_lin, b_lin = (
        params["w_ih"], params["w_hh"], params["b_ih"], params["b_hh"],
        params["w_lin"], params["b_lin"])
    four_h, input_size = w_ih.shape
    H = four_h // 4
    assert input_size == 1, "kernel is specialized for input_size == 1"

    # Pre-scale i/f/o gate columns by 0.5 (g columns stay x1.0) so the kernel
    # computes sigmoid via a single full-vreg tanh.
    lane = jnp.arange(4 * H)
    pre_scale = jnp.where((lane >= 2 * H) & (lane < 3 * H),
                          1.0, 0.5).astype(jnp.float32)

    packed = {
        "wih_s": w_ih.T.astype(jnp.float32) * pre_scale,              # (1, 4H)
        "whh_s": w_hh.T.astype(jnp.float32) * pre_scale,              # (H, 4H)
        "b_s": ((b_ih + b_hh).astype(jnp.float32)
                * pre_scale).reshape(1, -1),                          # (1, 4H)
        "wlin": w_lin.astype(jnp.float32),                            # (out, H)
        "blin": b_lin.astype(jnp.float32).reshape(-1, 1),             # (out, 1)
    }
    return jax.tree_util.tree_map(jax.device_put, packed)


@jax.jit
def lstm_network_forward(seq, packed):
    """Replicates LSTMnetwork.forward(seq) -> pred[-1] (shape (output_size,))."""
    output_size = packed["wlin"].shape[0]
    seq1d = seq.reshape(-1).astype(jnp.float32)   # seq.view(L,1,-1) with input=1

    smem = pl.BlockSpec(memory_space=pltpu.MemorySpace.SMEM)
    vmem = pl.BlockSpec(memory_space=pltpu.MemorySpace.VMEM)
    out = pl.pallas_call(
        lstm_forward_kernel,
        out_shape=jax.ShapeDtypeStruct((output_size, 1), jnp.float32),
        in_specs=[smem, vmem, vmem, vmem, vmem, vmem],
        out_specs=vmem,
    )(seq1d, packed["wih_s"], packed["whh_s"], packed["b_s"],
      packed["wlin"], packed["blin"])
    return out.reshape(output_size)


def lstm_network_forward_ref(seq, params):
    """Pure-JAX reference (mirrors torch.nn.LSTM + Linear, zero initial state)."""
    w_ih, w_hh, b_ih, b_hh, w_lin, b_lin = (
        params["w_ih"], params["w_hh"], params["b_ih"], params["b_hh"],
        params["w_lin"], params["b_lin"])
    H = w_hh.shape[1]
    L = seq.shape[0]
    x = seq.reshape(L, -1).astype(jnp.float32)
    h = jnp.zeros((H,), jnp.float32)
    c = jnp.zeros((H,), jnp.float32)

    def step(carry, x_t):
        h, c = carry
        g = w_ih @ x_t + w_hh @ h + b_ih + b_hh
        i = jax.nn.sigmoid(g[0:H])
        f = jax.nn.sigmoid(g[H:2 * H])
        gg = jnp.tanh(g[2 * H:3 * H])
        o = jax.nn.sigmoid(g[3 * H:4 * H])
        c = f * c + i * gg
        h = o * jnp.tanh(c)
        return (h, c), h

    (h, c), _ = jax.lax.scan(step, (h, c), x)
    return w_lin @ h + b_lin


def init_params(key, input_size=1, hidden_size=32, output_size=1):
    # Deterministic init matching PyTorch's U(-1/sqrt(H), 1/sqrt(H)) convention.
    k = 1.0 / jnp.sqrt(jnp.float32(hidden_size))
    ks = jax.random.split(key, 6)
    u = lambda kk, shape: jax.random.uniform(kk, shape, jnp.float32, -k, k)
    return {
        "w_ih": u(ks[0], (4 * hidden_size, input_size)),
        "w_hh": u(ks[1], (4 * hidden_size, hidden_size)),
        "b_ih": u(ks[2], (4 * hidden_size,)),
        "b_hh": u(ks[3], (4 * hidden_size,)),
        "w_lin": u(ks[4], (output_size, hidden_size)),
        "b_lin": u(ks[5], (output_size,)),
    }


if __name__ == "__main__":
    # hidden=32 so 4H == 128 exactly fills the lane dimension (lane-aligned gate
    # slices); the PyTorch default of 100 would need lane padding.
    INPUT_SIZE, HIDDEN_SIZE, OUTPUT_SIZE, SEQ_LEN = 1, 32, 1, 8

    key = jax.random.PRNGKey(0)
    pkey, skey = jax.random.split(key)
    params = init_params(pkey, INPUT_SIZE, HIDDEN_SIZE, OUTPUT_SIZE)
    seq = jax.random.normal(skey, (SEQ_LEN,), jnp.float32)   # 1-D price series

    packed = pack_params(params)                             # pack once, reuse

    pred = jax.block_until_ready(lstm_network_forward(seq, packed))   # compile
    pred = jax.block_until_ready(lstm_network_forward(seq, packed))   # steady-state
    ref = jax.block_until_ready(lstm_network_forward_ref(seq, params))

    assert pred.shape == (OUTPUT_SIZE,)
    assert jnp.allclose(pred, ref, atol=1e-5, rtol=1e-5), (pred, ref)
    print("KERNEL_OK")
</pallas_src>

<mosaic_0001>
module attributes {stable_mosaic.version = 11 : i64} {
  func.func @lstm_forward_kernel(%arg0: memref<8xf32, #tpu.memory_space<smem>>, %arg1: memref<1x128xf32, #tpu.memory_space<vmem>>, %arg2: memref<32x128xf32, #tpu.memory_space<vmem>>, %arg3: memref<1x128xf32, #tpu.memory_space<vmem>>, %arg4: memref<1x32xf32, #tpu.memory_space<vmem>>, %arg5: memref<1x1xf32, #tpu.memory_space<vmem>>, %arg6: memref<1x1xf32, #tpu.memory_space<vmem>>) attributes {dimension_semantics = [], scalar_prefetch = 0 : i64, scratch_operands = 0 : i64, tpu.core_type = #tpu.core_type<tc>} {
    %c0 = arith.constant 0 : index
    %c0_0 = arith.constant 0 : index
    %0 = vector.load %arg2[%c0, %c0_0] : memref<32x128xf32, #tpu.memory_space<vmem>>, vector<32x128xf32>
    %c0_1 = arith.constant 0 : index
    %c0_2 = arith.constant 0 : index
    %1 = vector.load %arg1[%c0_1, %c0_2] : memref<1x128xf32, #tpu.memory_space<vmem>>, vector<1x128xf32>
    %c0_3 = arith.constant 0 : index
    %c0_4 = arith.constant 0 : index
    %2 = vector.load %arg3[%c0_3, %c0_4] : memref<1x128xf32, #tpu.memory_space<vmem>>, vector<1x128xf32>
    %3 = tpu.iota {dimensions = array<i32: 1>} : vector<1x128xi32>
    %c64_i32 = arith.constant 64 : i32
    %4 = vector.broadcast %c64_i32 : i32 to vector<1x128xi32>
    %5 = arith.cmpi sge, %3, %4 : vector<1x128xi32>
    %c96_i32 = arith.constant 96 : i32
    %6 = vector.broadcast %c96_i32 : i32 to vector<1x128xi32>
    %7 = arith.cmpi slt, %3, %6 : vector<1x128xi32>
    %8 = arith.andi %5, %7 : vector<1x128xi1>
    %cst = arith.constant 1.000000e+00 : f32
    %cst_5 = arith.constant 5.000000e-01 : f32
    %9 = vector.broadcast %cst : f32 to vector<1x128xf32>
    %10 = vector.broadcast %cst_5 : f32 to vector<1x128xf32>
    %11 = arith.select %8, %9, %10 : vector<1x128xi1>, vector<1x128xf32>
    %cst_6 = arith.constant 0.000000e+00 : f32
    %cst_7 = arith.constant 5.000000e-01 : f32
    %12 = vector.broadcast %cst_6 : f32 to vector<1x128xf32>
    %13 = vector.broadcast %cst_7 : f32 to vector<1x128xf32>
    %14 = arith.select %8, %12, %13 : vector<1x128xi1>, vector<1x128xf32>
    %cst_8 = arith.constant 0.000000e+00 : f32
    %15 = vector.broadcast %cst_8 : f32 to vector<1x32xf32>
    %c0_9 = arith.constant 0 : index
    %16 = memref.load %arg0[%c0_9] : memref<8xf32, #tpu.memory_space<smem>>
    %17 = vector.broadcast %16 : f32 to vector<1x128xf32>
    %18 = arith.mulf %17, %1 : vector<1x128xf32>
    %19 = arith.addf %18, %2 : vector<1x128xf32>
    %20 = math.tanh %19 : vector<1x128xf32>
    %21 = arith.mulf %20, %11 : vector<1x128xf32>
    %22 = arith.addf %21, %14 : vector<1x128xf32>
    %23 = vector.extract_strided_slice %22 {offsets = [0, 0], sizes = [1, 32], strides = [1, 1]} : vector<1x128xf32> to vector<1x32xf32>
    %24 = vector.extract_strided_slice %22 {offsets = [0, 32], sizes = [1, 32], strides = [1, 1]} : vector<1x128xf32> to vector<1x32xf32>
    %25 = vector.extract_strided_slice %22 {offsets = [0, 64], sizes = [1, 32], strides = [1, 1]} : vector<1x128xf32> to vector<1x32xf32>
    %26 = vector.extract_strided_slice %22 {offsets = [0, 96], sizes = [1, 32], strides = [1, 1]} : vector<1x128xf32> to vector<1x32xf32>
    %27 = arith.mulf %24, %15 : vector<1x32xf32>
    %28 = arith.mulf %23, %25 : vector<1x32xf32>
    %29 = arith.addf %27, %28 : vector<1x32xf32>
    %30 = math.tanh %29 : vector<1x32xf32>
    %31 = arith.mulf %26, %30 : vector<1x32xf32>
    %c1 = arith.constant 1 : index
    %32 = memref.load %arg0[%c1] : memref<8xf32, #tpu.memory_space<smem>>
    %33 = vector.broadcast %32 : f32 to vector<1x128xf32>
    %34 = arith.mulf %33, %1 : vector<1x128xf32>
    %35 = arith.addf %34, %2 : vector<1x128xf32>
    %cst_10 = arith.constant dense<0.000000e+00> : vector<1x128xf32>
    %36 = tpu.matmul %31, %0, %cst_10 {dimension_numbers = #tpu.dot_dimension_numbers<[1], [0], [0], [1], [0, 0, 1, 1], [], []>} : vector<1x32xf32>, vector<32x128xf32>, vector<1x128xf32> -> vector<1x128xf32>
    %37 = arith.addf %35, %36 : vector<1x128xf32>
    %38 = math.tanh %37 : vector<1x128xf32>
    %39 = arith.mulf %38, %11 : vector<1x128xf32>
    %40 = arith.addf %39, %14 : vector<1x128xf32>
    %41 = vector.extract_strided_slice %40 {offsets = [0, 0], sizes = [1, 32], strides = [1, 1]} : vector<1x128xf32> to vector<1x32xf32>
    %42 = vector.extract_strided_slice %40 {offsets = [0, 32], sizes = [1, 32], strides = [1, 1]} : vector<1x128xf32> to vector<1x32xf32>
    %43 = vector.extract_strided_slice %40 {offsets = [0, 64], sizes = [1, 32], strides = [1, 1]} : vector<1x128xf32> to vector<1x32xf32>
    %44 = vector.extract_strided_slice %40 {offsets = [0, 96], sizes = [1, 32], strides = [1, 1]} : vector<1x128xf32> to vector<1x32xf32>
    %45 = arith.mulf %42, %29 : vector<1x32xf32>
    %46 = arith.mulf %41, %43 : vector<1x32xf32>
    %47 = arith.addf %45, %46 : vector<1x32xf32>
    %48 = math.tanh %47 : vector<1x32xf32>
    %49 = arith.mulf %44, %48 : vector<1x32xf32>
    %c2 = arith.constant 2 : index
    %50 = memref.load %arg0[%c2] : memref<8xf32, #tpu.memory_space<smem>>
    %51 = vector.broadcast %50 : f32 to vector<1x128xf32>
    %52 = arith.mulf %51, %1 : vector<1x128xf32>
    %53 = arith.addf %52, %2 : vector<1x128xf32>
    %cst_11 = arith.constant dense<0.000000e+00> : vector<1x128xf32>
    %54 = tpu.matmul %49, %0, %cst_11 {dimension_numbers = #tpu.dot_dimension_numbers<[1], [0], [0], [1], [0, 0, 1, 1], [], []>} : vector<1x32xf32>, vector<32x128xf32>, vector<1x128xf32> -> vector<1x128xf32>
    %55 = arith.addf %53, %54 : vector<1x128xf32>
    %56 = math.tanh %55 : vector<1x128xf32>
    %57 = arith.mulf %56, %11 : vector<1x128xf32>
    %58 = arith.addf %57, %14 : vector<1x128xf32>
    %59 = vector.extract_strided_slice %58 {offsets = [0, 0], sizes = [1, 32], strides = [1, 1]} : vector<1x128xf32> to vector<1x32xf32>
    %60 = vector.extract_strided_slice %58 {offsets = [0, 32], sizes = [1, 32], strides = [1, 1]} : vector<1x128xf32> to vector<1x32xf32>
    %61 = vector.extract_strided_slice %58 {offsets = [0, 64], sizes = [1, 32], strides = [1, 1]} : vector<1x128xf32> to vector<1x32xf32>
    %62 = vector.extract_strided_slice %58 {offsets = [0, 96], sizes = [1, 32], strides = [1, 1]} : vector<1x128xf32> to vector<1x32xf32>
    %63 = arith.mulf %60, %47 : vector<1x32xf32>
    %64 = arith.mulf %59, %61 : vector<1x32xf32>
    %65 = arith.addf %63, %64 : vector<1x32xf32>
    %66 = math.tanh %65 : vector<1x32xf32>
    %67 = arith.mulf %62, %66 : vector<1x32xf32>
    %c3 = arith.constant 3 : index
    %68 = memref.load %arg0[%c3] : memref<8xf32, #tpu.memory_space<smem>>
    %69 = vector.broadcast %68 : f32 to vector<1x128xf32>
    %70 = arith.mulf %69, %1 : vector<1x128xf32>
    %71 = arith.addf %70, %2 : vector<1x128xf32>
    %cst_12 = arith.constant dense<0.000000e+00> : vector<1x128xf32>
    %72 = tpu.matmul %67, %0, %cst_12 {dimension_numbers = #tpu.dot_dimension_numbers<[1], [0], [0], [1], [0, 0, 1, 1], [], []>} : vector<1x32xf32>, vector<32x128xf32>, vector<1x128xf32> -> vector<1x128xf32>
    %73 = arith.addf %71, %72 : vector<1x128xf32>
    %74 = math.tanh %73 : vector<1x128xf32>
    %75 = arith.mulf %74, %11 : vector<1x128xf32>
    %76 = arith.addf %75, %14 : vector<1x128xf32>
    %77 = vector.extract_strided_slice %76 {offsets = [0, 0], sizes = [1, 32], strides = [1, 1]} : vector<1x128xf32> to vector<1x32xf32>
    %78 = vector.extract_strided_slice %76 {offsets = [0, 32], sizes = [1, 32], strides = [1, 1]} : vector<1x128xf32> to vector<1x32xf32>
    %79 = vector.extract_strided_slice %76 {offsets = [0, 64], sizes = [1, 32], strides = [1, 1]} : vector<1x128xf32> to vector<1x32xf32>
    %80 = vector.extract_strided_slice %76 {offsets = [0, 96], sizes = [1, 32], strides = [1, 1]} : vector<1x128xf32> to vector<1x32xf32>
    %81 = arith.mulf %78, %65 : vector<1x32xf32>
    %82 = arith.mulf %77, %79 : vector<1x32xf32>
    %83 = arith.addf %81, %82 : vector<1x32xf32>
    %84 = math.tanh %83 : vector<1x32xf32>
    %85 = arith.mulf %80, %84 : vector<1x32xf32>
    %c4 = arith.constant 4 : index
    %86 = memref.load %arg0[%c4] : memref<8xf32, #tpu.memory_space<smem>>
    %87 = vector.broadcast %86 : f32 to vector<1x128xf32>
    %88 = arith.mulf %87, %1 : vector<1x128xf32>
    %89 = arith.addf %88, %2 : vector<1x128xf32>
    %cst_13 = arith.constant dense<0.000000e+00> : vector<1x128xf32>
    %90 = tpu.matmul %85, %0, %cst_13 {dimension_numbers = #tpu.dot_dimension_numbers<[1], [0], [0], [1], [0, 0, 1, 1], [], []>} : vector<1x32xf32>, vector<32x128xf32>, vector<1x128xf32> -> vector<1x128xf32>
    %91 = arith.addf %89, %90 : vector<1x128xf32>
    %92 = math.tanh %91 : vector<1x128xf32>
    %93 = arith.mulf %92, %11 : vector<1x128xf32>
    %94 = arith.addf %93, %14 : vector<1x128xf32>
    %95 = vector.extract_strided_slice %94 {offsets = [0, 0], sizes = [1, 32], strides = [1, 1]} : vector<1x128xf32> to vector<1x32xf32>
    %96 = vector.extract_strided_slice %94 {offsets = [0, 32], sizes = [1, 32], strides = [1, 1]} : vector<1x128xf32> to vector<1x32xf32>
    %97 = vector.extract_strided_slice %94 {offsets = [0, 64], sizes = [1, 32], strides = [1, 1]} : vector<1x128xf32> to vector<1x32xf32>
    %98 = vector.extract_strided_slice %94 {offsets = [0, 96], sizes = [1, 32], strides = [1, 1]} : vector<1x128xf32> to vector<1x32xf32>
    %99 = arith.mulf %96, %83 : vector<1x32xf32>
    %100 = arith.mulf %95, %97 : vector<1x32xf32>
    %101 = arith.addf %99, %100 : vector<1x32xf32>
    %102 = math.tanh %101 : vector<1x32xf32>
    %103 = arith.mulf %98, %102 : vector<1x32xf32>
    %c5 = arith.constant 5 : index
    %104 = memref.load %arg0[%c5] : memref<8xf32, #tpu.memory_space<smem>>
    %105 = vector.broadcast %104 : f32 to vector<1x128xf32>
    %106 = arith.mulf %105, %1 : vector<1x128xf32>
    %107 = arith.addf %106, %2 : vector<1x128xf32>
    %cst_14 = arith.constant dense<0.000000e+00> : vector<1x128xf32>
    %108 = tpu.matmul %103, %0, %cst_14 {dimension_numbers = #tpu.dot_dimension_numbers<[1], [0], [0], [1], [0, 0, 1, 1], [], []>} : vector<1x32xf32>, vector<32x128xf32>, vector<1x128xf32> -> vector<1x128xf32>
    %109 = arith.addf %107, %108 : vector<1x128xf32>
    %110 = math.tanh %109 : vector<1x128xf32>
    %111 = arith.mulf %110, %11 : vector<1x128xf32>
    %112 = arith.addf %111, %14 : vector<1x128xf32>
    %113 = vector.extract_strided_slice %112 {offsets = [0, 0], sizes = [1, 32], strides = [1, 1]} : vector<1x128xf32> to vector<1x32xf32>
    %114 = vector.extract_strided_slice %112 {offsets = [0, 32], sizes = [1, 32], strides = [1, 1]} : vector<1x128xf32> to vector<1x32xf32>
    %115 = vector.extract_strided_slice %112 {offsets = [0, 64], sizes = [1, 32], strides = [1, 1]} : vector<1x128xf32> to vector<1x32xf32>
    %116 = vector.extract_strided_slice %112 {offsets = [0, 96], sizes = [1, 32], strides = [1, 1]} : vector<1x128xf32> to vector<1x32xf32>
    %117 = arith.mulf %114, %101 : vector<1x32xf32>
    %118 = arith.mulf %113, %115 : vector<1x32xf32>
    %119 = arith.addf %117, %118 : vector<1x32xf32>
    %120 = math.tanh %119 : vector<1x32xf32>
    %121 = arith.mulf %116, %120 : vector<1x32xf32>
    %c6 = arith.constant 6 : index
    %122 = memref.load %arg0[%c6] : memref<8xf32, #tpu.memory_space<smem>>
    %123 = vector.broadcast %122 : f32 to vector<1x128xf32>
    %124 = arith.mulf %123, %1 : vector<1x128xf32>
    %125 = arith.addf %124, %2 : vector<1x128xf32>
    %cst_15 = arith.constant dense<0.000000e+00> : vector<1x128xf32>
    %126 = tpu.matmul %121, %0, %cst_15 {dimension_numbers = #tpu.dot_dimension_numbers<[1], [0], [0], [1], [0, 0, 1, 1], [], []>} : vector<1x32xf32>, vector<32x128xf32>, vector<1x128xf32> -> vector<1x128xf32>
    %127 = arith.addf %125, %126 : vector<1x128xf32>
    %128 = math.tanh %127 : vector<1x128xf32>
    %129 = arith.mulf %128, %11 : vector<1x128xf32>
    %130 = arith.addf %129, %14 : vector<1x128xf32>
    %131 = vector.extract_strided_slice %130 {offsets = [0, 0], sizes = [1, 32], strides = [1, 1]} : vector<1x128xf32> to vector<1x32xf32>
    %132 = vector.extract_strided_slice %130 {offsets = [0, 32], sizes = [1, 32], strides = [1, 1]} : vector<1x128xf32> to vector<1x32xf32>
    %133 = vector.extract_strided_slice %130 {offsets = [0, 64], sizes = [1, 32], strides = [1, 1]} : vector<1x128xf32> to vector<1x32xf32>
    %134 = vector.extract_strided_slice %130 {offsets = [0, 96], sizes = [1, 32], strides = [1, 1]} : vector<1x128xf32> to vector<1x32xf32>
    %135 = arith.mulf %132, %119 : vector<1x32xf32>
    %136 = arith.mulf %131, %133 : vector<1x32xf32>
    %137 = arith.addf %135, %136 : vector<1x32xf32>
    %138 = math.tanh %137 : vector<1x32xf32>
    %139 = arith.mulf %134, %138 : vector<1x32xf32>
    %c7 = arith.constant 7 : index
    %140 = memref.load %arg0[%c7] : memref<8xf32, #tpu.memory_space<smem>>
    %141 = vector.broadcast %140 : f32 to vector<1x128xf32>
    %142 = arith.mulf %141, %1 : vector<1x128xf32>
    %143 = arith.addf %142, %2 : vector<1x128xf32>
    %cst_16 = arith.constant dense<0.000000e+00> : vector<1x128xf32>
    %144 = tpu.matmul %139, %0, %cst_16 {dimension_numbers = #tpu.dot_dimension_numbers<[1], [0], [0], [1], [0, 0, 1, 1], [], []>} : vector<1x32xf32>, vector<32x128xf32>, vector<1x128xf32> -> vector<1x128xf32>
    %145 = arith.addf %143, %144 : vector<1x128xf32>
    %146 = math.tanh %145 : vector<1x128xf32>
    %147 = arith.mulf %146, %11 : vector<1x128xf32>
    %148 = arith.addf %147, %14 : vector<1x128xf32>
    %149 = vector.extract_strided_slice %148 {offsets = [0, 0], sizes = [1, 32], strides = [1, 1]} : vector<1x128xf32> to vector<1x32xf32>
    %150 = vector.extract_strided_slice %148 {offsets = [0, 32], sizes = [1, 32], strides = [1, 1]} : vector<1x128xf32> to vector<1x32xf32>
    %151 = vector.extract_strided_slice %148 {offsets = [0, 64], sizes = [1, 32], strides = [1, 1]} : vector<1x128xf32> to vector<1x32xf32>
    %152 = vector.extract_strided_slice %148 {offsets = [0, 96], sizes = [1, 32], strides = [1, 1]} : vector<1x128xf32> to vector<1x32xf32>
    %153 = arith.mulf %150, %137 : vector<1x32xf32>
    %154 = arith.mulf %149, %151 : vector<1x32xf32>
    %155 = arith.addf %153, %154 : vector<1x32xf32>
    %156 = math.tanh %155 : vector<1x32xf32>
    %157 = arith.mulf %152, %156 : vector<1x32xf32>
    %c0_17 = arith.constant 0 : index
    %c0_18 = arith.constant 0 : index
    %158 = vector.load %arg4[%c0_17, %c0_18] : memref<1x32xf32, #tpu.memory_space<vmem>>, vector<1x32xf32>
    %159 = arith.mulf %157, %158 : vector<1x32xf32>
    %cst_19 = arith.constant dense<0.000000e+00> : vector<1xf32>
    %160 = vector.multi_reduction <add>, %159, %cst_19 [1] : vector<1x32xf32> to vector<1xf32>
    %161 = vector.shape_cast %160 : vector<1xf32> to vector<1x1xf32>
    %c0_20 = arith.constant 0 : index
    %c0_21 = arith.constant 0 : index
    %162 = vector.load %arg5[%c0_20, %c0_21] : memref<1x1xf32, #tpu.memory_space<vmem>>, vector<1x1xf32>
    %163 = arith.addf %161, %162 : vector<1x1xf32>
    %c0_22 = arith.constant 0 : index
    %c0_23 = arith.constant 0 : index
    %164 = vector.load %arg6[%c0_22, %c0_23] : memref<1x1xf32, #tpu.memory_space<vmem>>, vector<1x1xf32>
    tpu.vector_store %arg6[%c0_22, %c0_23], %163 {strides = array<i32>} : memref<1x1xf32, #tpu.memory_space<vmem>>, vector<1x1xf32>,
    return
  }
}

</mosaic_0001>

<bundles_post_ra>
// kernel: lstm_network_forward.1
= control target key start
LH: loop header
LB: loop body
LE: loop exit
PB: predicated region body
PF: predicated region fallthrough
CT: control target
= control target key end

     0   :  { %s1352_s0 = inlined_call_operand.vmem [shape: f32[8], index: 0, kind: input, shape index: {}]   ;;  %s1353_s1 = inlined_call_operand.vmem [shape: f32[1,128], index: 1, kind: input, shape index: {}]   ;;  %s1354_s2 = inlined_call_operand.hbm [shape: f32[32,128], index: 2, kind: input, shape index: {}]   ;;  %s1355_s3 = inlined_call_operand.vmem [shape: f32[1,128], index: 3, kind: input, shape index: {}]   ;;  %s1356_s4 = inlined_call_operand.vmem [shape: f32[1,32], index: 4, kind: input, shape index: {}]   ;;  %s1357_s5 = inlined_call_operand.<no memory space> [shape: f32[1,1], index: 5, kind: input, shape index: {}]   ;;  %s1358_s6 = inlined_call_operand.hbm [shape: f32[1,1], index: 6, kind: output, shape index: {}]  }
   0x1   :  { %v11_v0 = vstv %s1357_s5 }
   0x2   :  { %12 = vst [vmem:[#allocation2] sm:$0x1] %v11_v0 }
   0x3   :  { %13 = vsyncpa [#allocation6], 0 }
   0x4   :  { %14 = vsyncpa [#allocation4], 0 }
   0x5   :  { %15 = vsyncpa [#allocation5], 0  ;;  %s22_s25 = sshll.u32 %s1352_s0, 4  ;;  %s23_s25 = int_to_ptr.vmem [resolvable:$true] %s22_s25 }
   0x6   :  { %s1069_s26 = scalar_lea.vmem %s23_s25, 16  ;;  %p1074_p1 = scmp.lt.s32.totalorder %s23_s25, %s23_s25 }
   0x7   :  { %p1070_p0 = scmp.ne.s32.totalorder %s23_s25, %s1069_s26  ;;  %p1075_p2 = scmp.lt.s32.totalorder %s1069_s26, %s1069_s26 }
   0x9   :  { %p1076_p3 = por %p1075_p2, %p1074_p1 }
   0xb   :  { %p1077_p4 = pnand %p1076_p3, %p1070_p0 }
   0xd   :  { %1080 = shalt.err (!%p1077_p4)
}
   0xe   :  { %s1131_s27 = smov [#allocation3]   ;;  %s1132_s28 = smov [#allocation7]  }
   0xf   :  { %25 = dma.vmem_to_smem %s23_s25, 16, %s1131_s27, [#allocation6]  }
  0x10   :  { %s33_s5 = sshll.u32 %s1132_s28, 4  ;;  %s1081_s7 = scalar_lea.hbm %s1354_s2, 512  ;;  %s34_s5 = int_to_ptr.vmem [resolvable:$true] %s33_s5 }
  0x11   :  { %p1082_p5 = scmp.ne.s32.totalorder %s1354_s2, %s1081_s7  ;;  %p1085_p6 = scmp.lt.u32.totalorder %s1081_s7, %s1354_s2 }
  0x13   :  { %p1087_p7 = pnand %p1085_p6, %p1082_p5 }
  0x15   :  { %1090 = shalt.err (!%p1087_p7)
}
  0x16   :  { %s1091_s11 = scalar_lea.vmem %s34_s5, 512  ;;  %p1096_p9 = scmp.lt.s32.totalorder %s34_s5, %s34_s5 }
  0x17   :  { %p1092_p8 = scmp.ne.s32.totalorder %s34_s5, %s1091_s11  ;;  %p1097_p10 = scmp.lt.s32.totalorder %s1091_s11, %s1091_s11 }
  0x19   :  { %p1098_p11 = por %p1097_p10, %p1096_p9 }
  0x1b   :  { %p1099_p12 = pnand %p1098_p11, %p1092_p8 }
  0x1d   :  { %1102 = shalt.err (!%p1099_p12)
}
  0x1e   :  { %s1133_s12 = smov 128   ;;  %s1134_s13 = smov 8  }
  0x1f   :  { %39 = dma.hbm_to_vmem [thread:$0]  %s1354_s2, 512, %s34_s5, [#allocation4], %s1133_s12, %s1133_s12, %s1134_s13  }
  0x20   :  { %1125 = dma.done.wait [#allocation6], 16  }
  0x21   :  { %1126 = vsyncadd [#allocation6], 4294967280 }
  0x22   :  { %1127 = dma.done.wait [#allocation4], 512  }
  0x23   :  { %1128 = vsyncadd [#allocation4], 4294966784 }
  0x24   :  { %52 = sfence }
  0x25   :  { %s66_s16 = sld [smem:[#allocation3]]  ;;  %v1199_v1 = vld [vmem:[%s1353_s1] sm:$0x1]  ;;  %v59_v2 = vlaneseq  ;;  %v1135_v8 = vmov 0.5   ;;  %s1136_s1 = smov 64   ;;  %v53_v19 = vld [vmem:[#allocation7] sm:$0xff] }
  0x26   :  { %v1204_v3 = vld [vmem:[%s1355_s3] sm:$0x1]  ;;  %s1137_s2 = smov 32   ;;  %v54_v20 = vld [vmem:[#allocation7 + $0x8] sm:$0xff]  ;;  %v55_v21 = vld [vmem:[#allocation7 + $0x10] sm:$0xff]  ;;  %v1138_v22 = vmov 0.0|0.0  }
  0x27   :  { %v60_v6 = vand.u32 127, %v59_v2  ;;  %983 = vmatprep.subr.bf16.mxu0 %v1138_v22  ;;  %v1217_v23 = vpack.c.bf16 %v54_v20, %v53_v19  ;;  %v56_v24 = vld [vmem:[#allocation7 + $0x18] sm:$0xff]  ;;  %vm1139_vm3 = vmmov 0   ;;  %v1140_v25 = vmov 0.0   ;;  %989 = vmatprep.subr.bf16.mxu1 %v1138_v22  ;;  %s857_s3 = sld [smem:[#allocation3 + $0x1]]  ;;  %s859_s21 = sld [smem:[#allocation3 + $0x2]] }
  0x28   :  { %914 = vmatprep.mubr.msk.f32.mxu0 %vm1139_vm3, %v1140_v25  ;;  %925 = vmatprep.mubr.msk.f32.mxu1 %vm1139_vm3, %v1140_v25  ;;  %v1225_v26 = vpack.c.bf16 %v56_v24, %v55_v21  ;;  %v96_v28 = vshrl.u32 %v59_v2, 7  ;;  %vm101_vm4 = vcmask 261120   ;;  %s861_s22 = sld [smem:[#allocation3 + $0x3]]  ;;  %s863_s23 = sld [smem:[#allocation3 + $0x4]]  ;;  %vm833_vm5 = vcmask 253952  }
  0x29   :  { %vm61_vm0 = vcmp.ge.s32.totalorder %v60_v6, 64  ;;  %vm62_vm1 = vcmp.lt.s32.totalorder %v60_v6, 96  ;;  %985 = vmatpush3.bf16.msra.mxu0 %v1217_v23  ;;  %991 = vmatpush3.bf16.msra.mxu1 %v1217_v23  ;;  %s865_s24 = sld [smem:[#allocation3 + $0x5]]  ;;  %s867_s25 = sld [smem:[#allocation3 + $0x6]]  ;;  %vm839_vm6 = vcmask 0  }
  0x2a   :  { %vm63_vm2 = vmand %vm61_vm0, %vm62_vm1  ;;  %986 = vmatprep.subr.bf16.mxu0 %v1138_v22  ;;  %992 = vmatprep.subr.bf16.mxu1 %v1138_v22  ;;  %v1235_v29 = vsub.s32 0, %v96_v28  ;;  %s869_s26 = sld [smem:[#allocation3 + $0x7]]  ;;  %s1141_s5 = smov 96  }
  0x2b   :  { %v67_v4 = vstv %s66_s16  ;;  %v1208_v9 = vsel %vm63_vm2, 1.0, %v1135_v8  ;;  %v1210_v11 = vsel %vm63_vm2, 0.0, %v1135_v8 }
  0x2c   :  { %v68_v5 = vmul.f32 %v67_v4, %v1199_v1 }
  0x2d   :  { %988 = vmatpush3.bf16.msra.mxu0 %v1225_v26  ;;  %994 = vmatpush3.bf16.msra.mxu1 %v1225_v26  ;;  %v91_v34 = vstv %s857_s3  ;;  %v196_v53 = vstv %s859_s21 }
  0x2e   :  { %v69_v7 = vadd.f32 %v68_v5, %v1204_v3  ;;  %995 = vmatprep.subr.bf16.mxu0 %v1138_v22  ;;  %1001 = vmatprep.subr.bf16.mxu1 %v1138_v22  ;;  %v92_v35 = vmul.f32 %v91_v34, %v1199_v1  ;;  %v197_v54 = vmul.f32 %v196_v53, %v1199_v1 }
  0x30   :  { %1037 = vtanh.f32 %v69_v7  ;;  %v93_v36 = vadd.f32 %v92_v35, %v1204_v3  ;;  %v198_v55 = vadd.f32 %v197_v54, %v1204_v3 }
  0x3a   :  { %v1038_v10 = vpop.eup %1037 }
  0x3b   :  { %v71_v12 = vmul.f32 %v1038_v10, %v1208_v9 }
  0x3d   :  { %v72_v13 = vadd.f32 %v71_v12, %v1210_v11  ;;  %v300_v12 = vstv %s861_s22 }
  0x3f   :  { %75 = vrot.lane.b32.xlu0 %v72_v13, %s1136_s1  ;;  %v73_v16 = vmul.f32 0.0, %v72_v13 }
  0xb1   :  { %v76_v14 = vpop.permute.xlu0 %75 }
  0xb2   :  { %v78_v15 = vmul.f32 %v76_v14, %v72_v13 }
  0xb4   :  { %80 = vrot.lane.b32.xlu0 %v78_v15, %s1137_s2 }
 0x126   :  { %v81_v17 = vpop.permute.xlu0 %80 }
 0x127   :  { %v83_v18 = vadd.f32 %v81_v17, %v73_v16 }
 0x129   :  { %1039 = vtanh.f32 %v83_v18 }
 0x133   :  { %v1040_v27 = vpop.eup %1039 }
 0x134   :  { %86 = vrot.lane.b32.xlu1 %v1040_v27, %s1136_s1 }
 0x1a6   :  { %v87_v30 = vpop.permute.xlu1 %86 }
 0x1a7   :  { %v89_v31 = vmul.f32 %v87_v30, %v72_v13  ;;  %v301_v13 = vmul.f32 %v300_v12, %v1199_v1 }
 0x1a9   :  { %v98_v32 = vrot.slane %v89_v31, %v1235_v29  ;;  %v302_v14 = vadd.f32 %v301_v13, %v1204_v3 }
 0x1ab   :  { %99 = vrot.lane.b32.xlu1 %v98_v32, %s1137_s2 }
 0x21d   :  { %v100_v33 = vpop.permute.xlu1 %99 }
 0x21e   :  { %915 = vmatmul.mubr.msk.f32.vlgmr.msra.gmra.mrb[0].mxu0 %vm101_vm4, %v100_v33 }
 0x21f   :  { %997 = vmatpush3.bf16.msra.mxu0 %v1217_v23  ;;  %936 = vmatprep.mubr.msk.f32.mxu0 %vm1139_vm3, %v1140_v25 }
 0x220   :  { %998 = vmatprep.subr.bf16.mxu0 %v1138_v22 }
 0x223   :  { %1000 = vmatpush3.bf16.msra.mxu0 %v1225_v26 }
 0x224   :  { %1007 = vmatprep.subr.bf16.mxu0 %v1138_v22 }
 0x2f1   :  { %v170_v37 = vpop.f32.mrb[0].mxu0 }
 0x2f2   :  { %v174_v38 = vadd.f32 %v170_v37, %v93_v36  ;;  %v916_v39 = vpop.f32.mrb[1].mxu0  ;;  %v404_v36 = vstv %s863_s23 }
 0x2f3   :  { %v405_v37 = vmul.f32 %v404_v36, %v1199_v1 }
 0x2f4   :  { %1041 = vtanh.f32 %v174_v38 }
 0x2f5   :  { %v406_v38 = vadd.f32 %v405_v37, %v1204_v3 }
 0x2fe   :  { %v1042_v40 = vpop.eup %1041 }
 0x2ff   :  { %v176_v41 = vmul.f32 %v1042_v40, %v1208_v9 }
 0x301   :  { %v177_v42 = vadd.f32 %v176_v41, %v1210_v11 }
 0x303   :  { %180 = vrot.lane.b32.xlu0 %v177_v42, %s1136_s1  ;;  %v178_v45 = vmul.f32 %v177_v42, %v83_v18 }
 0x375   :  { %v181_v43 = vpop.permute.xlu0 %180 }
 0x376   :  { %v183_v44 = vmul.f32 %v181_v43, %v177_v42 }
 0x378   :  { %185 = vrot.lane.b32.xlu1 %v183_v44, %s1137_s2 }
 0x3ea   :  { %v186_v46 = vpop.permute.xlu1 %185 }
 0x3eb   :  { %v188_v47 = vadd.f32 %v186_v46, %v178_v45 }
 0x3ed   :  { %1043 = vtanh.f32 %v188_v47 }
 0x3f7   :  { %v1044_v48 = vpop.eup %1043 }
 0x3f8   :  { %191 = vrot.lane.b32.xlu0 %v1044_v48, %s1136_s1 }
 0x46a   :  { %v192_v49 = vpop.permute.xlu0 %191 }
 0x46b   :  { %v194_v50 = vmul.f32 %v192_v49, %v177_v42 }
 0x46d   :  { %v203_v51 = vrot.slane %v194_v50, %v1235_v29 }
 0x46f   :  { %204 = vrot.lane.b32.xlu1 %v203_v51, %s1137_s2 }
 0x4e1   :  { %v205_v52 = vpop.permute.xlu1 %204 }
 0x4e2   :  { %926 = vmatmul.mubr.msk.f32.vlgmr.msra.gmra.mrb[0].mxu1 %vm101_vm4, %v205_v52 }
 0x4e3   :  { %1003 = vmatpush3.bf16.msra.mxu1 %v1217_v23  ;;  %947 = vmatprep.mubr.msk.f32.mxu1 %vm1139_vm3, %v1140_v25 }
 0x4e4   :  { %1004 = vmatprep.subr.bf16.mxu1 %v1138_v22 }
 0x4e7   :  { %1006 = vmatpush3.bf16.msra.mxu1 %v1225_v26 }
 0x4e8   :  { %1013 = vmatprep.subr.bf16.mxu1 %v1138_v22 }
 0x5b5   :  { %v274_v56 = vpop.f32.mrb[0].mxu1 }
 0x5b6   :  { %v278_v57 = vadd.f32 %v274_v56, %v198_v55  ;;  %v927_v58 = vpop.f32.mrb[1].mxu1  ;;  %v508_v55 = vstv %s865_s24 }
 0x5b7   :  { %v509_v56 = vmul.f32 %v508_v55, %v1199_v1 }
 0x5b8   :  { %1045 = vtanh.f32 %v278_v57 }
 0x5b9   :  { %v510_v57 = vadd.f32 %v509_v56, %v1204_v3 }
 0x5c2   :  { %v1046_v59 = vpop.eup %1045 }
 0x5c3   :  { %v280_v60 = vmul.f32 %v1046_v59, %v1208_v9 }
 0x5c5   :  { %v281_v61 = vadd.f32 %v280_v60, %v1210_v11 }
 0x5c7   :  { %284 = vrot.lane.b32.xlu0 %v281_v61, %s1136_s1  ;;  %v282_v0 = vmul.f32 %v281_v61, %v188_v47 }
 0x639   :  { %v285_v62 = vpop.permute.xlu0 %284 }
 0x63a   :  { %v287_v63 = vmul.f32 %v285_v62, %v281_v61 }
 0x63c   :  { %289 = vrot.lane.b32.xlu1 %v287_v63, %s1137_s2 }
 0x6ae   :  { %v290_v2 = vpop.permute.xlu1 %289 }
 0x6af   :  { %v292_v4 = vadd.f32 %v290_v2, %v282_v0 }
 0x6b1   :  { %1047 = vtanh.f32 %v292_v4 }
 0x6bb   :  { %v1048_v5 = vpop.eup %1047 }
 0x6bc   :  { %295 = vrot.lane.b32.xlu0 %v1048_v5, %s1136_s1 }
 0x72e   :  { %v296_v6 = vpop.permute.xlu0 %295 }
 0x72f   :  { %v298_v7 = vmul.f32 %v296_v6, %v281_v61 }
 0x731   :  { %v307_v8 = vrot.slane %v298_v7, %v1235_v29 }
 0x733   :  { %308 = vrot.lane.b32.xlu1 %v307_v8, %s1137_s2  ;;  %v612_v8 = vstv %s867_s25 }
 0x7a5   :  { %v309_v10 = vpop.permute.xlu1 %308 }
 0x7a6   :  { %937 = vmatmul.mubr.msk.f32.vlgmr.msra.gmra.mrb[2].mxu0 %vm101_vm4, %v309_v10  ;;  %v613_v10 = vmul.f32 %v612_v8, %v1199_v1 }
 0x7a7   :  { %1009 = vmatpush3.bf16.msra.mxu0 %v1217_v23  ;;  %958 = vmatprep.mubr.msk.f32.mxu0 %vm1139_vm3, %v1140_v25 }
 0x7a8   :  { %1010 = vmatprep.subr.bf16.mxu0 %v1138_v22  ;;  %v614_v12 = vadd.f32 %v613_v10, %v1204_v3 }
 0x7ab   :  { %1012 = vmatpush3.bf16.msra.mxu0 %v1225_v26 }
 0x7ac   :  { %1019 = vmatprep.subr.bf16.mxu0 %v1138_v22 }
 0x879   :  { %v378_v15 = vpop.f32.mrb[2].mxu0 }
 0x87a   :  { %v382_v16 = vadd.f32 %v378_v15, %v302_v14  ;;  %v938_v17 = vpop.f32.mrb[3].mxu0 }
 0x87c   :  { %1049 = vtanh.f32 %v382_v16 }
 0x886   :  { %v1050_v18 = vpop.eup %1049 }
 0x887   :  { %v384_v19 = vmul.f32 %v1050_v18, %v1208_v9 }
 0x889   :  { %v385_v20 = vadd.f32 %v384_v19, %v1210_v11 }
 0x88b   :  { %388 = vrot.lane.b32.xlu0 %v385_v20, %s1136_s1  ;;  %v386_v27 = vmul.f32 %v385_v20, %v292_v4 }
 0x8fd   :  { %v389_v21 = vpop.permute.xlu0 %388 }
 0x8fe   :  { %v391_v24 = vmul.f32 %v389_v21, %v385_v20 }
 0x900   :  { %393 = vrot.lane.b32.xlu1 %v391_v24, %s1137_s2 }
 0x972   :  { %v394_v28 = vpop.permute.xlu1 %393 }
 0x973   :  { %v396_v30 = vadd.f32 %v394_v28, %v386_v27 }
 0x975   :  { %1051 = vtanh.f32 %v396_v30 }
 0x97f   :  { %v1052_v31 = vpop.eup %1051 }
 0x980   :  { %399 = vrot.lane.b32.xlu0 %v1052_v31, %s1136_s1 }
 0x9f2   :  { %v400_v32 = vpop.permute.xlu0 %399 }
 0x9f3   :  { %v402_v33 = vmul.f32 %v400_v32, %v385_v20 }
 0x9f5   :  { %v411_v34 = vrot.slane %v402_v33, %v1235_v29 }
 0x9f7   :  { %412 = vrot.lane.b32.xlu1 %v411_v34, %s1137_s2  ;;  %v716_v34 = vstv %s869_s26 }
 0xa69   :  { %v413_v35 = vpop.permute.xlu1 %412 }
 0xa6a   :  { %948 = vmatmul.mubr.msk.f32.vlgmr.msra.gmra.mrb[2].mxu1 %vm101_vm4, %v413_v35  ;;  %v717_v35 = vmul.f32 %v716_v34, %v1199_v1  ;;  %v819_v1 = vld [vmem:[%s1356_s4] sm:$0x1]  ;;  %s1142_s4 = smov [#allocation8]  }
 0xa6b   :  { %1015 = vmatpush3.bf16.msra.mxu1 %v1217_v23  ;;  %969 = vmatprep.mubr.msk.f32.mxu1 %vm1139_vm3, %v1140_v25  ;;  %s847_s29 = sshll.u32 %s1142_s4, 4  ;;  %s848_s29 = int_to_ptr.vmem [resolvable:$true] %s847_s29 }
 0xa6c   :  { %1016 = vmatprep.subr.bf16.mxu1 %v1138_v22  ;;  %v718_v36 = vadd.f32 %v717_v35, %v1204_v3  ;;  %s1103_s30 = scalar_lea.vmem %s848_s29, 16  ;;  %s1107_s7 = scalar_lea.vmem %s848_s29, 32 }
 0xa6d   :  { %p1104_p13 = scmp.ne.s32.totalorder %s848_s29, %s1103_s30  ;;  %p1108_p0 = scmp.lt.s32.totalorder %s848_s29, %s848_s29 }
 0xa6e   :  { %p1109_p1 = scmp.lt.s32.totalorder %s1107_s7, %s1103_s30 }
 0xa6f   :  { %1018 = vmatpush3.bf16.msra.mxu1 %v1225_v26 }
 0xa70   :  { %p1110_p2 = por %p1109_p1, %p1108_p0 }
 0xa72   :  { %p1111_p3 = pnand %p1110_p2, %p1104_p13 }
 0xb3d   :  { %v482_v39 = vpop.f32.mrb[2].mxu1 }
 0xb3e   :  { %v486_v40 = vadd.f32 %v482_v39, %v406_v38  ;;  %v949_v41 = vpop.f32.mrb[3].mxu1 }
 0xb40   :  { %1053 = vtanh.f32 %v486_v40 }
 0xb4a   :  { %v1054_v42 = vpop.eup %1053 }
 0xb4b   :  { %v488_v43 = vmul.f32 %v1054_v42, %v1208_v9 }
 0xb4d   :  { %v489_v44 = vadd.f32 %v488_v43, %v1210_v11 }
 0xb4f   :  { %492 = vrot.lane.b32.xlu0 %v489_v44, %s1136_s1  ;;  %v490_v47 = vmul.f32 %v489_v44, %v396_v30 }
 0xbc1   :  { %v493_v45 = vpop.permute.xlu0 %492 }
 0xbc2   :  { %v495_v46 = vmul.f32 %v493_v45, %v489_v44 }
 0xbc4   :  { %497 = vrot.lane.b32.xlu1 %v495_v46, %s1137_s2 }
 0xc36   :  { %v498_v48 = vpop.permute.xlu1 %497 }
 0xc37   :  { %v500_v49 = vadd.f32 %v498_v48, %v490_v47 }
 0xc39   :  { %1055 = vtanh.f32 %v500_v49 }
 0xc43   :  { %v1056_v50 = vpop.eup %1055 }
 0xc44   :  { %503 = vrot.lane.b32.xlu0 %v1056_v50, %s1136_s1 }
 0xcb6   :  { %v504_v51 = vpop.permute.xlu0 %503 }
 0xcb7   :  { %v506_v52 = vmul.f32 %v504_v51, %v489_v44 }
 0xcb9   :  { %v515_v53 = vrot.slane %v506_v52, %v1235_v29 }
 0xcbb   :  { %516 = vrot.lane.b32.xlu1 %v515_v53, %s1137_s2  ;;  %v837_v53 = vld [vmem:[#allocation2] sm:$0x1] }
 0xd2d   :  { %v517_v54 = vpop.permute.xlu1 %516 }
 0xd2e   :  { %959 = vmatmul.mubr.msk.f32.vlgmr.msra.gmra.mrb[4].mxu0 %vm101_vm4, %v517_v54 }
 0xd2f   :  { %1021 = vmatpush3.bf16.msra.mxu0 %v1217_v23  ;;  %980 = vmatprep.mubr.msk.f32.mxu0 %vm1139_vm3, %v1140_v25 }
 0xd30   :  { %1022 = vmatprep.subr.bf16.mxu0 %v1138_v22 }
 0xd33   :  { %1024 = vmatpush3.bf16.msra.mxu0 %v1225_v26 }
 0xe01   :  { %v586_v58 = vpop.f32.mrb[4].mxu0 }
 0xe02   :  { %v590_v59 = vadd.f32 %v586_v58, %v510_v57  ;;  %v960_v60 = vpop.f32.mrb[5].mxu0 }
 0xe04   :  { %1057 = vtanh.f32 %v590_v59 }
 0xe0e   :  { %v1058_v61 = vpop.eup %1057 }
 0xe0f   :  { %v592_v23 = vmul.f32 %v1058_v61, %v1208_v9 }
 0xe11   :  { %v593_v62 = vadd.f32 %v592_v23, %v1210_v11 }
 0xe13   :  { %596 = vrot.lane.b32.xlu0 %v593_v62, %s1136_s1  ;;  %v594_v26 = vmul.f32 %v593_v62, %v500_v49 }
 0xe85   :  { %v597_v22 = vpop.permute.xlu0 %596 }
 0xe86   :  { %v599_v25 = vmul.f32 %v597_v22, %v593_v62 }
 0xe88   :  { %601 = vrot.lane.b32.xlu1 %v599_v25, %s1137_s2 }
 0xefa   :  { %v602_v63 = vpop.permute.xlu1 %601 }
 0xefb   :  { %v604_v0 = vadd.f32 %v602_v63, %v594_v26 }
 0xefd   :  { %1059 = vtanh.f32 %v604_v0 }
 0xf07   :  { %v1060_v2 = vpop.eup %1059 }
 0xf08   :  { %607 = vrot.lane.b32.xlu0 %v1060_v2, %s1136_s1 }
 0xf7a   :  { %v608_v4 = vpop.permute.xlu0 %607 }
 0xf7b   :  { %v610_v5 = vmul.f32 %v608_v4, %v593_v62 }
 0xf7d   :  { %v619_v6 = vrot.slane %v610_v5, %v1235_v29 }
 0xf7f   :  { %620 = vrot.lane.b32.xlu1 %v619_v6, %s1137_s2 }
 0xff1   :  { %v621_v7 = vpop.permute.xlu1 %620 }
 0xff2   :  { %970 = vmatmul.mubr.msk.f32.vlgmr.msra.gmra.mrb[4].mxu1 %vm101_vm4, %v621_v7 }
0x10c5   :  { %v690_v13 = vpop.f32.mrb[4].mxu1 }
0x10c6   :  { %v694_v14 = vadd.f32 %v690_v13, %v614_v12  ;;  %v971_v15 = vpop.f32.mrb[5].mxu1 }
0x10c8   :  { %1061 = vtanh.f32 %v694_v14 }
0x10d2   :  { %v1062_v16 = vpop.eup %1061 }
0x10d3   :  { %v696_v17 = vmul.f32 %v1062_v16, %v1208_v9 }
0x10d5   :  { %v697_v18 = vadd.f32 %v696_v17, %v1210_v11 }
0x10d7   :  { %700 = vrot.lane.b32.xlu0 %v697_v18, %s1136_s1  ;;  %v698_v21 = vmul.f32 %v697_v18, %v604_v0 }
0x1149   :  { %v701_v19 = vpop.permute.xlu0 %700 }
0x114a   :  { %v703_v20 = vmul.f32 %v701_v19, %v697_v18 }
0x114c   :  { %705 = vrot.lane.b32.xlu1 %v703_v20, %s1137_s2 }
0x11be   :  { %v706_v24 = vpop.permute.xlu1 %705 }
0x11bf   :  { %v708_v27 = vadd.f32 %v706_v24, %v698_v21 }
0x11c1   :  { %1063 = vtanh.f32 %v708_v27 }
0x11cb   :  { %v1064_v28 = vpop.eup %1063 }
0x11cc   :  { %711 = vrot.lane.b32.xlu0 %v1064_v28, %s1136_s1 }
0x123e   :  { %v712_v30 = vpop.permute.xlu0 %711 }
0x123f   :  { %v714_v31 = vmul.f32 %v712_v30, %v697_v18 }
0x1241   :  { %v723_v32 = vrot.slane %v714_v31, %v1235_v29 }
0x1243   :  { %724 = vrot.lane.b32.xlu1 %v723_v32, %s1137_s2 }
0x12b5   :  { %v725_v33 = vpop.permute.xlu1 %724 }
0x12b6   :  { %981 = vmatmul.mubr.msk.f32.vlgmr.msra.gmra.mrb[6].mxu0 %vm101_vm4, %v725_v33 }
0x1389   :  { %v794_v37 = vpop.f32.mrb[6].mxu0 }
0x138a   :  { %v798_v38 = vadd.f32 %v794_v37, %v718_v36  ;;  %v982_v39 = vpop.f32.mrb[7].mxu0 }
0x138c   :  { %1065 = vtanh.f32 %v798_v38 }
0x1396   :  { %v1066_v40 = vpop.eup %1065 }
0x1397   :  { %v800_v41 = vmul.f32 %v1066_v40, %v1208_v9 }
0x1399   :  { %v801_v42 = vadd.f32 %v800_v41, %v1210_v11 }
0x139b   :  { %804 = vrot.lane.b32.xlu0 %v801_v42, %s1136_s1  ;;  %v802_v3 = vmul.f32 %v801_v42, %v708_v27 }
0x140d   :  { %v805_v43 = vpop.permute.xlu0 %804 }
0x140e   :  { %v807_v44 = vmul.f32 %v805_v43, %v801_v42 }
0x1410   :  { %809 = vrot.lane.b32.xlu1 %v807_v44, %s1137_s2 }
0x1414   :  { %821 = vrot.lane.b32.xlu1 %v819_v1, %s1141_s5 }
0x1482   :  { %v810_v45 = vpop.permute.xlu1 %809 }
0x1483   :  { %v812_v46 = vadd.f32 %v810_v45, %v802_v3 }
0x1485   :  { %1067 = vtanh.f32 %v812_v46 }
0x1486   :  { %v822_v11 = vpop.permute.xlu1 %821 }
0x148f   :  { %v1068_v47 = vpop.eup %1067 }
0x1490   :  { %815 = vrot.lane.b32.xlu0 %v1068_v47, %s1136_s1 }
0x1502   :  { %v816_v9 = vpop.permute.xlu0 %815 }
0x1503   :  { %v818_v48 = vmul.f32 %v816_v9, %v801_v42 }
0x1505   :  { %v824_v49 = vmul.f32 %v822_v11, %v818_v48 }
0x1507   :  { %v829_v50 = vrot.slane %v824_v49, %v1235_v29 }
0x1509   :  { %830 = vrot.lane.b32.xlu0 %v829_v50, %s1137_s2 }
0x157b   :  { %v831_v51 = vpop.permute.xlu0 %830 }
0x157c   :  { %v834_v52 = vsel %vm833_vm5, %v831_v51, 0.0 }
0x157d   :  { %835 = vadd.xlane.f32.xlu1 %v834_v52 }
0x160a   :  { %v836_v54 = vpop.xlane.xlu1 %835 }
0x160b   :  { %v838_v55 = vadd.f32 %v837_v53, %v836_v54 }
0x160d   :  { %840 = vst.msk [vmem:[#allocation8] sm:$0x1] %vm839_vm6, %v838_v55 }
0x160e   :  { %1114 = shalt.err (!%p1111_p3)
}
0x160f   :  { %s1115_s0 = scalar_lea.hbm %s1358_s6, 16 }
0x1610   :  { %p1116_p4 = scmp.ne.s32.totalorder %s1358_s6, %s1115_s0  ;;  %p1119_p5 = scmp.lt.u32.totalorder %s1115_s0, %s1358_s6 }
0x1612   :  { %p1121_p6 = pnand %p1119_p5, %p1116_p4 }
0x1614   :  { %1124 = shalt.err (!%p1121_p6)
}
0x1615   :  { %850 = dma.vmem_to_hbm [thread:$0]  %s848_s29, 16, %s1358_s6, [#allocation5]  }
0x1616   :  { %1129 = dma.done.wait [#allocation5], 16  }
0x1617   :  { %1130 = vsyncadd [#allocation5], 4294967280 }
0x1618   :  { %854 = vsyncpa [#allocation4], 1 }
0x1619   :  { %855 = vsyncpa [#allocation5], 1 }
0x161a   :  { %856 = vsyncpa [#allocation6], 1 }

</bundles_post_ra>
